<compile_context>
chip_gen: v7x
topology: tpu7x:2x2x1
jax: 0.10.0
libtpu: 0.0.40
codegen_flags: <defaults>
</compile_context>

<pallas_src>
import functools

import jax
import jax.numpy as jnp
from jax.experimental import pallas as pl
from jax.experimental.pallas import tpu as pltpu


# ---------------------------------------------------------------------------
# Kernels
# ---------------------------------------------------------------------------

def _conv1x1_kernel(x_ref, w_ref, scale_ref, bias_ref, o_ref, *, apply_relu):
    acc = jnp.dot(x_ref[...], w_ref[...], preferred_element_type=jnp.float32)
    out = acc * scale_ref[...] + bias_ref[...]
    if apply_relu:
        out = jnp.maximum(out, 0.0)
    o_ref[...] = out.astype(o_ref.dtype)


def _conv1x1_residual_kernel(x_ref, w_ref, scale_ref, bias_ref, res_ref, o_ref,
                             *, apply_relu):
    acc = jnp.dot(x_ref[...], w_ref[...], preferred_element_type=jnp.float32)
    out = acc * scale_ref[...] + bias_ref[...] + res_ref[...].astype(jnp.float32)
    if apply_relu:
        out = jnp.maximum(out, 0.0)
    o_ref[...] = out.astype(o_ref.dtype)


def _conv3x3_kernel(x_ref, w_ref, scale_ref, bias_ref, o_ref, *, H, W, cin, cout):
    # x_ref: (1, H+2, W+2, cin) spatially padded image; w_ref: (3, 3, cin, cout)
    acc = jnp.zeros((H * W, cout), dtype=jnp.float32)
    for kh in range(3):
        for kw in range(3):
            win = x_ref[0, kh:kh + H, kw:kw + W, :]            # (H, W, cin)
            acc = acc + jnp.dot(win.reshape(H * W, cin), w_ref[kh, kw],
                                preferred_element_type=jnp.float32)
    out = jnp.maximum(acc * scale_ref[...] + bias_ref[...], 0.0)
    o_ref[...] = out.reshape(1, H, W, cout).astype(o_ref.dtype)


# ---------------------------------------------------------------------------
# Wrappers
# ---------------------------------------------------------------------------

def _pick_block_rows(rows, widest_dim, dtype_bytes=4, target_tile_bytes=2 << 20):
    """Largest row tile that (a) divides `rows` exactly (no pad / masked
    remainder), (b) is a multiple of 8, (c) keeps one operand tile <= ~2 MiB so
    the double-buffered working set fits comfortably in VMEM on v5e/v6e/v7x."""
    cap = max(8, target_tile_bytes // max(1, widest_dim * dtype_bytes))
    if rows <= cap or rows % 8 != 0:
        return rows  # single full-extent block (always legal)
    for cand in (8192, 4096, 2048, 1024, 512, 256, 128, 64, 32, 16, 8):
        if cand <= cap and rows % cand == 0:
            return cand
    return rows


def conv1x1_bn_act(x2d, w, scale, bias, *, residual=None, apply_relu=True):
    """(rows, Cin) @ (Cin, Cout) * scale + bias [+ residual] [relu]."""
    rows, cin = x2d.shape
    cout = w.shape[1]
    block_rows = _pick_block_rows(rows, max(cin, cout),
                                  jnp.dtype(x2d.dtype).itemsize)
    grid = (rows // block_rows,)

    scale2 = jnp.asarray(scale, jnp.float32).reshape(1, cout)
    bias2 = jnp.asarray(bias, jnp.float32).reshape(1, cout)

    in_specs = [
        pl.BlockSpec((block_rows, cin), lambda i: (i, 0)),
        pl.BlockSpec((cin, cout), lambda i: (0, 0)),
        pl.BlockSpec((1, cout), lambda i: (0, 0)),
        pl.BlockSpec((1, cout), lambda i: (0, 0)),
    ]
    args = [x2d, w.astype(x2d.dtype), scale2, bias2]
    if residual is None:
        kernel = functools.partial(_conv1x1_kernel, apply_relu=apply_relu)
    else:
        in_specs.append(pl.BlockSpec((block_rows, cout), lambda i: (i, 0)))
        args.append(residual)
        kernel = functools.partial(_conv1x1_residual_kernel, apply_relu=apply_relu)

    return pl.pallas_call(
        kernel,
        out_shape=jax.ShapeDtypeStruct((rows, cout), x2d.dtype),
        grid_spec=pl.GridSpec(
            grid=grid,
            in_specs=in_specs,
            out_specs=pl.BlockSpec((block_rows, cout), lambda i: (i, 0)),
        ),
        compiler_params=pltpu.CompilerParams(dimension_semantics=("parallel",)),
    )(*args)


def conv3x3_bn_relu(x_nhwc, w, scale, bias, *, stride=1):
    """3x3 conv (pad=1) + BN affine + relu, gridded over images."""
    N, H, W, cin = x_nhwc.shape
    cout = w.shape[-1]
    xp = jnp.pad(x_nhwc, ((0, 0), (1, 1), (1, 1), (0, 0)))  # required halo pad
    scale2 = jnp.asarray(scale, jnp.float32).reshape(1, cout)
    bias2 = jnp.asarray(bias, jnp.float32).reshape(1, cout)

    kernel = functools.partial(_conv3x3_kernel, H=H, W=W, cin=cin, cout=cout)
    out = pl.pallas_call(
        kernel,
        out_shape=jax.ShapeDtypeStruct((N, H, W, cout), x_nhwc.dtype),
        grid_spec=pl.GridSpec(
            grid=(N,),
            in_specs=[
                pl.BlockSpec((1, H + 2, W + 2, cin), lambda n: (n, 0, 0, 0)),
                pl.BlockSpec((3, 3, cin, cout), lambda n: (0, 0, 0, 0)),
                pl.BlockSpec((1, cout), lambda n: (0, 0)),
                pl.BlockSpec((1, cout), lambda n: (0, 0)),
            ],
            out_specs=pl.BlockSpec((1, H, W, cout), lambda n: (n, 0, 0, 0)),
        ),
        compiler_params=pltpu.CompilerParams(dimension_semantics=("parallel",)),
    )(xp, w.astype(x_nhwc.dtype), scale2, bias2)

    if stride != 1:
        # TODO(synk): dedicated strided 3x3 kernel; stride-1 + subsample is
        # mathematically identical but does stride**2 extra compute.
        out = out[:, ::stride, ::stride, :]
    return out


def _fold_bn(gamma, beta, mean, var, eps=1e-5):
    gamma = jnp.asarray(gamma, jnp.float32)
    beta = jnp.asarray(beta, jnp.float32)
    mean = jnp.asarray(mean, jnp.float32)
    var = jnp.asarray(var, jnp.float32)
    scale = gamma / jnp.sqrt(var + eps)
    bias = beta - mean * scale
    return scale, bias


def bottleneck_forward(x_nchw, params, *, stride=1, downsample=None):
    """JAX/Pallas mirror of Bottleneck.forward (inference-mode BatchNorm)."""
    N, Cin, H, W = x_nchw.shape
    xt = jnp.transpose(x_nchw, (0, 2, 3, 1))  # NHWC (layout glue)

    w1 = jnp.transpose(params["conv1_w"][:, :, 0, 0], (1, 0))   # (Cin, planes)
    w2 = jnp.transpose(params["conv2_w"], (2, 3, 1, 0))         # (3,3,planes,planes)
    w3 = jnp.transpose(params["conv3_w"][:, :, 0, 0], (1, 0))   # (planes, 4*planes)
    s1, b1 = _fold_bn(*params["bn1"])
    s2, b2 = _fold_bn(*params["bn2"])
    s3, b3 = _fold_bn(*params["bn3"])
    planes = w1.shape[1]

    # conv1 (1x1) + bn1 + relu
    y1 = conv1x1_bn_act(xt.reshape(N * H * W, Cin), w1, s1, b1, apply_relu=True)
    y1 = y1.reshape(N, H, W, planes)

    # conv2 (3x3, stride, pad=1) + bn2 + relu
    y2 = conv3x3_bn_relu(y1, w2, s2, b2, stride=stride)
    Ho, Wo = y2.shape[1], y2.shape[2]

    # residual path
    if downsample is None:
        residual = xt.reshape(N * H * W, Cin)
    else:
        wd = jnp.transpose(downsample["conv_w"][:, :, 0, 0], (1, 0))
        sd, bd = _fold_bn(*downsample["bn"])
        x_s = xt[:, ::stride, ::stride, :]  # 1x1 conv w/ stride == subsample + 1x1
        residual = conv1x1_bn_act(x_s.reshape(N * Ho * Wo, Cin), wd, sd, bd,
                                  apply_relu=False)

    # conv3 (1x1) + bn3 + residual add + relu (fused)
    y3 = conv1x1_bn_act(y2.reshape(N * Ho * Wo, planes), w3, s3, b3,
                        residual=residual, apply_relu=True)
    out = y3.reshape(N, Ho, Wo, 4 * planes)
    return jnp.transpose(out, (0, 3, 1, 2))  # back to NCHW


# ---------------------------------------------------------------------------
# Pure-JAX reference (for correctness check)
# ---------------------------------------------------------------------------

def _ref_bottleneck(x_nchw, params, *, stride=1, downsample=None):
    prec = jax.lax.Precision.HIGHEST
    xt = jnp.transpose(x_nchw, (0, 2, 3, 1)).astype(jnp.float32)
    N, H, W, Cin = xt.shape
    w1 = jnp.transpose(params["conv1_w"][:, :, 0, 0], (1, 0)).astype(jnp.float32)
    w2 = jnp.transpose(params["conv2_w"], (2, 3, 1, 0)).astype(jnp.float32)
    w3 = jnp.transpose(params["conv3_w"][:, :, 0, 0], (1, 0)).astype(jnp.float32)
    s1, b1 = _fold_bn(*params["bn1"])
    s2, b2 = _fold_bn(*params["bn2"])
    s3, b3 = _fold_bn(*params["bn3"])

    y1 = jnp.maximum(jnp.einsum("nhwc,co->nhwo", xt, w1, precision=prec) * s1 + b1, 0.0)
    xp = jnp.pad(y1, ((0, 0), (1, 1), (1, 1), (0, 0)))
    Ho = (H - 1) // stride + 1
    Wo = (W - 1) // stride + 1
    acc = jnp.zeros((N, Ho, Wo, w2.shape[-1]), jnp.float32)
    for kh in range(3):
        for kw in range(3):
            win = xp[:, kh:kh + H, kw:kw + W, :][:, ::stride, ::stride, :]
            acc = acc + jnp.einsum("nhwc,co->nhwo", win, w2[kh, kw], precision=prec)
    y2 = jnp.maximum(acc * s2 + b2, 0.0)

    if downsample is None:
        residual = xt
    else:
        wd = jnp.transpose(downsample["conv_w"][:, :, 0, 0], (1, 0)).astype(jnp.float32)
        sd, bd = _fold_bn(*downsample["bn"])
        residual = jnp.einsum("nhwc,co->nhwo", xt[:, ::stride, ::stride, :], wd,
                              precision=prec) * sd + bd

    y3 = jnp.maximum(jnp.einsum("nhwc,co->nhwo", y2, w3, precision=prec) * s3 + b3
                     + residual, 0.0)
    return jnp.transpose(y3, (0, 3, 1, 2)).astype(x_nchw.dtype)


# ---------------------------------------------------------------------------
# Demo
# ---------------------------------------------------------------------------

if __name__ == "__main__":
    key = jax.random.PRNGKey(0)
    k = jax.random.split(key, 8)

    N, H, W = 2, 16, 16
    planes = 4
    inplanes = planes * 4  # identity residual is valid -> downsample=None, stride=1

    x = jax.random.normal(k[0], (N, inplanes, H, W), dtype=jnp.float32)

    def bn_params(c, kk):
        kg, kb, km, kv = jax.random.split(kk, 4)
        gamma = jax.random.uniform(kg, (c,), jnp.float32, 0.5, 1.5)
        beta = 0.1 * jax.random.normal(kb, (c,), jnp.float32)
        mean = 0.1 * jax.random.normal(km, (c,), jnp.float32)
        var = jax.random.uniform(kv, (c,), jnp.float32, 0.5, 1.5)
        return (gamma, beta, mean, var)

    params = {
        "conv1_w": 0.2 * jax.random.normal(k[1], (planes, inplanes, 1, 1), jnp.float32),
        "conv2_w": 0.2 * jax.random.normal(k[2], (planes, planes, 3, 3), jnp.float32),
        "conv3_w": 0.2 * jax.random.normal(k[3], (4 * planes, planes, 1, 1), jnp.float32),
        "bn1": bn_params(planes, k[4]),
        "bn2": bn_params(planes, k[5]),
        "bn3": bn_params(4 * planes, k[6]),
    }

    out = bottleneck_forward(x, params, stride=1, downsample=None)
    out = jax.block_until_ready(out)

    ref = _ref_bottleneck(x, params, stride=1, downsample=None)
    assert out.shape == (N, 4 * planes, H, W), out.shape
    assert out.dtype == x.dtype
    max_err = float(jnp.max(jnp.abs(out - ref)))
    assert jnp.allclose(out, ref, atol=2e-2, rtol=2e-2), max_err

    print("KERNEL_OK")
</pallas_src>

<mosaic_0001>
module attributes {stable_mosaic.version = 11 : i64} {
  func.func @_conv1x1_kernel(%arg0: i32, %arg1: memref<512x16xf32, #tpu.memory_space<vmem>>, %arg2: memref<16x4xf32, #tpu.memory_space<vmem>>, %arg3: memref<1x4xf32, #tpu.memory_space<vmem>>, %arg4: memref<1x4xf32, #tpu.memory_space<vmem>>, %arg5: memref<512x4xf32, #tpu.memory_space<vmem>>) attributes {dimension_semantics = [#tpu.dimension_semantics<parallel>], iteration_bounds = array<i64: 1>, scalar_prefetch = 0 : i64, scratch_operands = 0 : i64, tpu.core_type = #tpu.core_type<tc>, window_params = [{transform_indices = @transform_0, window_bounds = array<i64: 512, 16>}, {pipeline_mode = #tpu.pipeline_mode<synchronous>, transform_indices = @transform_1, window_bounds = array<i64: 16, 4>}, {pipeline_mode = #tpu.pipeline_mode<synchronous>, transform_indices = @transform_2, window_bounds = array<i64: 1, 4>}, {pipeline_mode = #tpu.pipeline_mode<synchronous>, transform_indices = @transform_3, window_bounds = array<i64: 1, 4>}, {transform_indices = @transform_4, window_bounds = array<i64: 512, 4>}]} {
    %c0 = arith.constant 0 : index
    %c0_0 = arith.constant 0 : index
    %0 = vector.load %arg1[%c0, %c0_0] : memref<512x16xf32, #tpu.memory_space<vmem>>, vector<512x16xf32>
    %c0_1 = arith.constant 0 : index
    %c0_2 = arith.constant 0 : index
    %1 = vector.load %arg2[%c0_1, %c0_2] : memref<16x4xf32, #tpu.memory_space<vmem>>, vector<16x4xf32>
    %cst = arith.constant dense<0.000000e+00> : vector<512x4xf32>
    %2 = tpu.matmul %0, %1, %cst {dimension_numbers = #tpu.dot_dimension_numbers<[1], [0], [0], [1], [0, 0, 1, 1], [], []>} : vector<512x16xf32>, vector<16x4xf32>, vector<512x4xf32> -> vector<512x4xf32>
    %c0_3 = arith.constant 0 : index
    %c0_4 = arith.constant 0 : index
    %3 = vector.load %arg3[%c0_3, %c0_4] : memref<1x4xf32, #tpu.memory_space<vmem>>, vector<1x4xf32>
    %4 = vector.broadcast %3 : vector<1x4xf32> to vector<512x4xf32>
    %5 = arith.mulf %2, %4 : vector<512x4xf32>
    %c0_5 = arith.constant 0 : index
    %c0_6 = arith.constant 0 : index
    %6 = vector.load %arg4[%c0_5, %c0_6] : memref<1x4xf32, #tpu.memory_space<vmem>>, vector<1x4xf32>
    %7 = vector.broadcast %6 : vector<1x4xf32> to vector<512x4xf32>
    %8 = arith.addf %5, %7 : vector<512x4xf32>
    %cst_7 = arith.constant 0.000000e+00 : f32
    %9 = vector.broadcast %cst_7 : f32 to vector<512x4xf32>
    %10 = arith.maximumf %8, %9 : vector<512x4xf32>
    %c0_8 = arith.constant 0 : index
    %c0_9 = arith.constant 0 : index
    %11 = vector.load %arg5[%c0_8, %c0_9] : memref<512x4xf32, #tpu.memory_space<vmem>>, vector<512x4xf32>
    tpu.vector_store %arg5[%c0_8, %c0_9], %10 {strides = array<i32>} : memref<512x4xf32, #tpu.memory_space<vmem>>, vector<512x4xf32>,
    return
  }
  func.func @transform_0(%arg0: i32) -> (i32, i32) {
    %c0_i32 = arith.constant 0 : i32
    %c0_i32_0 = arith.constant 0 : i32
    return %arg0, %c0_i32 : i32, i32
  }
  func.func @transform_1(%arg0: i32) -> (i32, i32) {
    %c0_i32 = arith.constant 0 : i32
    %c0_i32_0 = arith.constant 0 : i32
    %c0_i32_1 = arith.constant 0 : i32
    return %c0_i32, %c0_i32_0 : i32, i32
  }
  func.func @transform_2(%arg0: i32) -> (i32, i32) {
    %c0_i32 = arith.constant 0 : i32
    %c0_i32_0 = arith.constant 0 : i32
    %c0_i32_1 = arith.constant 0 : i32
    return %c0_i32, %c0_i32_0 : i32, i32
  }
  func.func @transform_3(%arg0: i32) -> (i32, i32) {
    %c0_i32 = arith.constant 0 : i32
    %c0_i32_0 = arith.constant 0 : i32
    %c0_i32_1 = arith.constant 0 : i32
    return %c0_i32, %c0_i32_0 : i32, i32
  }
  func.func @transform_4(%arg0: i32) -> (i32, i32) {
    %c0_i32 = arith.constant 0 : i32
    %c0_i32_0 = arith.constant 0 : i32
    return %arg0, %c0_i32 : i32, i32
  }
}

</mosaic_0001>

<bundles_post_ra>
// kernel: tpu_custom_call.1
= control target key start
LH: loop header
LB: loop body
LE: loop exit
PB: predicated region body
PF: predicated region fallthrough
CT: control target
= control target key end

     0   :  { %vm83_vm0 = vcmask 130048   ;;  %vm867_vm1 = vcmask 31744   ;;  %s1855_s1 = inlined_call_operand.vmem [shape: f32[16,4], index: 1, kind: input, shape index: {}]   ;;  %s1856_s0 = inlined_call_operand.vmem [shape: f32[512,16], index: 0, kind: input, shape index: {}]   ;;  %s1857_s2 = inlined_call_operand.vmem [shape: f32[1,4], index: 2, kind: input, shape index: {}]   ;;  %s1858_s3 = inlined_call_operand.vmem [shape: f32[1,4], index: 3, kind: input, shape index: {}]   ;;  %s1859_s4 = inlined_call_operand.vmem [shape: f32[512,4], index: 4, kind: output, shape index: {}]  }
   0x1   :  { %v81_v0 = vld [vmem:[%s1855_s1] sm:$0xff]  ;;  %v82_v1 = vld [vmem:[%s1855_s1 + $0x8] sm:$0xff]  ;;  %v19_v7 = vld [vmem:[%s1856_s0 + $0x10] sm:$0xff] }
   0x2   :  { %v17_v2 = vld [vmem:[%s1856_s0] sm:$0xff]  ;;  %v1168_v3 = vpack.c.bf16 %v82_v1, %v81_v0  ;;  %v18_v5 = vld [vmem:[%s1856_s0 + $0x8] sm:$0xff]  ;;  %v51_v8 = vld [vmem:[%s1856_s0 + $0x110] sm:$0xff] }
   0x3   :  { %1072 = vmatprep.mubr.msk.f32.mxu0 %vm83_vm0, %v17_v2  ;;  %v49_v4 = vld [vmem:[%s1856_s0 + $0x100] sm:$0xff]  ;;  %v50_v6 = vld [vmem:[%s1856_s0 + $0x108] sm:$0xff]  ;;  %v20_v9 = vld [vmem:[%s1856_s0 + $0x18] sm:$0xff] }
   0x4   :  { %1120 = vmatprep.mubr.msk.f32.mxu1 %vm83_vm0, %v49_v4  ;;  %1169 = vmatprep.subr.bf16.mxu0 %v1168_v3  ;;  %v52_v10 = vld [vmem:[%s1856_s0 + $0x118] sm:$0xff]  ;;  %v21_v11 = vld [vmem:[%s1856_s0 + $0x20] sm:$0xff]  ;;  %v22_v13 = vld [vmem:[%s1856_s0 + $0x28] sm:$0xff] }
   0x5   :  { %1172 = vmatprep.subr.bf16.mxu1 %v1168_v3  ;;  %1171 = vmatpush3.bf16.msra.mxu0 %v1168_v3  ;;  %v53_v12 = vld [vmem:[%s1856_s0 + $0x120] sm:$0xff]  ;;  %v54_v14 = vld [vmem:[%s1856_s0 + $0x128] sm:$0xff]  ;;  %v23_v15 = vld [vmem:[%s1856_s0 + $0x30] sm:$0xff] }
   0x6   :  { %1173 = vmatpush3.bf16.msra.mxu1 %v1168_v3  ;;  %v55_v16 = vld [vmem:[%s1856_s0 + $0x130] sm:$0xff]  ;;  %v24_v17 = vld [vmem:[%s1856_s0 + $0x38] sm:$0xff]  ;;  %v25_v19 = vld [vmem:[%s1856_s0 + $0x40] sm:$0xff] }
   0x7   :  { %v56_v18 = vld [vmem:[%s1856_s0 + $0x138] sm:$0xff]  ;;  %v57_v20 = vld [vmem:[%s1856_s0 + $0x140] sm:$0xff]  ;;  %v26_v21 = vld [vmem:[%s1856_s0 + $0x48] sm:$0xff] }
   0x8   :  { %1073 = vmatmul.mubr.msk.f32.vlgmr.msra.gmra.mrb[0].mxu0 %vm83_vm0, %v18_v5  ;;  %v58_v22 = vld [vmem:[%s1856_s0 + $0x148] sm:$0xff]  ;;  %v27_v23 = vld [vmem:[%s1856_s0 + $0x50] sm:$0xff]  ;;  %v28_v25 = vld [vmem:[%s1856_s0 + $0x58] sm:$0xff] }
   0x9   :  { %1121 = vmatmul.mubr.msk.f32.vlgmr.msra.gmra.mrb[0].mxu1 %vm83_vm0, %v50_v6  ;;  %1075 = vmatprep.mubr.msk.f32.mxu0 %vm83_vm0, %v19_v7  ;;  %v59_v24 = vld [vmem:[%s1856_s0 + $0x150] sm:$0xff]  ;;  %v60_v26 = vld [vmem:[%s1856_s0 + $0x158] sm:$0xff]  ;;  %v29_v27 = vld [vmem:[%s1856_s0 + $0x60] sm:$0xff] }
   0xa   :  { %1123 = vmatprep.mubr.msk.f32.mxu1 %vm83_vm0, %v51_v8  ;;  %v61_v28 = vld [vmem:[%s1856_s0 + $0x160] sm:$0xff]  ;;  %v30_v29 = vld [vmem:[%s1856_s0 + $0x68] sm:$0xff]  ;;  %v31_v31 = vld [vmem:[%s1856_s0 + $0x70] sm:$0xff] }
   0xb   :  { %v62_v30 = vld [vmem:[%s1856_s0 + $0x168] sm:$0xff]  ;;  %v63_v32 = vld [vmem:[%s1856_s0 + $0x170] sm:$0xff]  ;;  %v32_v33 = vld [vmem:[%s1856_s0 + $0x78] sm:$0xff] }
   0xc   :  { %1076 = vmatmul.mubr.msk.f32.gmra.mrb[2].mxu0 %vm83_vm0, %v20_v9  ;;  %v64_v34 = vld [vmem:[%s1856_s0 + $0x178] sm:$0xff]  ;;  %v33_v35 = vld [vmem:[%s1856_s0 + $0x80] sm:$0xff]  ;;  %v34_v37 = vld [vmem:[%s1856_s0 + $0x88] sm:$0xff] }
   0xd   :  { %1124 = vmatmul.mubr.msk.f32.gmra.mrb[2].mxu1 %vm83_vm0, %v52_v10  ;;  %1078 = vmatprep.mubr.msk.f32.mxu0 %vm83_vm0, %v21_v11  ;;  %v65_v36 = vld [vmem:[%s1856_s0 + $0x180] sm:$0xff]  ;;  %v66_v38 = vld [vmem:[%s1856_s0 + $0x188] sm:$0xff]  ;;  %v35_v39 = vld [vmem:[%s1856_s0 + $0x90] sm:$0xff] }
   0xe   :  { %1126 = vmatprep.mubr.msk.f32.mxu1 %vm83_vm0, %v53_v12  ;;  %v67_v40 = vld [vmem:[%s1856_s0 + $0x190] sm:$0xff]  ;;  %v36_v41 = vld [vmem:[%s1856_s0 + $0x98] sm:$0xff]  ;;  %v37_v43 = vld [vmem:[%s1856_s0 + $0xa0] sm:$0xff] }
   0xf   :  { %v68_v42 = vld [vmem:[%s1856_s0 + $0x198] sm:$0xff]  ;;  %v69_v44 = vld [vmem:[%s1856_s0 + $0x1a0] sm:$0xff]  ;;  %v38_v45 = vld [vmem:[%s1856_s0 + $0xa8] sm:$0xff] }
  0x10   :  { %1079 = vmatmul.mubr.msk.f32.gmra.mrb[4].mxu0 %vm83_vm0, %v22_v13  ;;  %v70_v46 = vld [vmem:[%s1856_s0 + $0x1a8] sm:$0xff]  ;;  %v39_v47 = vld [vmem:[%s1856_s0 + $0xb0] sm:$0xff]  ;;  %v40_v49 = vld [vmem:[%s1856_s0 + $0xb8] sm:$0xff] }
  0x11   :  { %1127 = vmatmul.mubr.msk.f32.gmra.mrb[4].mxu1 %vm83_vm0, %v54_v14  ;;  %1081 = vmatprep.mubr.msk.f32.mxu0 %vm83_vm0, %v23_v15  ;;  %v71_v48 = vld [vmem:[%s1856_s0 + $0x1b0] sm:$0xff]  ;;  %v72_v50 = vld [vmem:[%s1856_s0 + $0x1b8] sm:$0xff]  ;;  %v41_v51 = vld [vmem:[%s1856_s0 + $0xc0] sm:$0xff] }
  0x12   :  { %1129 = vmatprep.mubr.msk.f32.mxu1 %vm83_vm0, %v55_v16  ;;  %v73_v52 = vld [vmem:[%s1856_s0 + $0x1c0] sm:$0xff]  ;;  %v42_v53 = vld [vmem:[%s1856_s0 + $0xc8] sm:$0xff]  ;;  %v43_v55 = vld [vmem:[%s1856_s0 + $0xd0] sm:$0xff] }
  0x13   :  { %v74_v54 = vld [vmem:[%s1856_s0 + $0x1c8] sm:$0xff]  ;;  %v75_v56 = vld [vmem:[%s1856_s0 + $0x1d0] sm:$0xff]  ;;  %v44_v57 = vld [vmem:[%s1856_s0 + $0xd8] sm:$0xff] }
  0x14   :  { %1082 = vmatmul.mubr.msk.f32.gmra.mrb[6].mxu0 %vm83_vm0, %v24_v17  ;;  %v76_v58 = vld [vmem:[%s1856_s0 + $0x1d8] sm:$0xff]  ;;  %v45_v59 = vld [vmem:[%s1856_s0 + $0xe0] sm:$0xff]  ;;  %v46_v61 = vld [vmem:[%s1856_s0 + $0xe8] sm:$0xff] }
  0x15   :  { %1130 = vmatmul.mubr.msk.f32.gmra.mrb[6].mxu1 %vm83_vm0, %v56_v18  ;;  %1084 = vmatprep.mubr.msk.f32.mxu0 %vm83_vm0, %v25_v19  ;;  %v77_v60 = vld [vmem:[%s1856_s0 + $0x1e0] sm:$0xff]  ;;  %v78_v62 = vld [vmem:[%s1856_s0 + $0x1e8] sm:$0xff]  ;;  %v47_v63 = vld [vmem:[%s1856_s0 + $0xf0] sm:$0xff] }
  0x16   :  { %1132 = vmatprep.mubr.msk.f32.mxu1 %vm83_vm0, %v57_v20  ;;  %v79_v0 = vld [vmem:[%s1856_s0 + $0x1f0] sm:$0xff]  ;;  %v48_v1 = vld [vmem:[%s1856_s0 + $0xf8] sm:$0xff]  ;;  %v1464_v3 = vld [vmem:[%s1857_s2] ss:$0 sm:$0xff] }
  0x17   :  { %v80_v2 = vld [vmem:[%s1856_s0 + $0x1f8] sm:$0xff]  ;;  %v1469_v5 = vld [vmem:[%s1858_s3] ss:$0 sm:$0xff] }
  0x18   :  { %1085 = vmatmul.mubr.msk.f32.gmra.mrb[8].mxu0 %vm83_vm0, %v26_v21 }
  0x19   :  { %1133 = vmatmul.mubr.msk.f32.gmra.mrb[8].mxu1 %vm83_vm0, %v58_v22  ;;  %1087 = vmatprep.mubr.msk.f32.mxu0 %vm83_vm0, %v27_v23 }
  0x1a   :  { %1135 = vmatprep.mubr.msk.f32.mxu1 %vm83_vm0, %v59_v24 }
  0x1c   :  { %1088 = vmatmul.mubr.msk.f32.gmra.mrb[10].mxu0 %vm83_vm0, %v28_v25 }
  0x1d   :  { %1136 = vmatmul.mubr.msk.f32.gmra.mrb[10].mxu1 %vm83_vm0, %v60_v26  ;;  %1090 = vmatprep.mubr.msk.f32.mxu0 %vm83_vm0, %v29_v27 }
  0x1e   :  { %1138 = vmatprep.mubr.msk.f32.mxu1 %vm83_vm0, %v61_v28 }
  0x20   :  { %1091 = vmatmul.mubr.msk.f32.gmra.mrb[12].mxu0 %vm83_vm0, %v30_v29 }
  0x21   :  { %1139 = vmatmul.mubr.msk.f32.gmra.mrb[12].mxu1 %vm83_vm0, %v62_v30  ;;  %1093 = vmatprep.mubr.msk.f32.mxu0 %vm83_vm0, %v31_v31 }
  0x22   :  { %1141 = vmatprep.mubr.msk.f32.mxu1 %vm83_vm0, %v63_v32 }
  0x24   :  { %1094 = vmatmul.mubr.msk.f32.gmra.mrb[14].mxu0 %vm83_vm0, %v32_v33 }
  0x25   :  { %1142 = vmatmul.mubr.msk.f32.gmra.mrb[14].mxu1 %vm83_vm0, %v64_v34  ;;  %1096 = vmatprep.mubr.msk.f32.mxu0 %vm83_vm0, %v33_v35 }
  0x26   :  { %1144 = vmatprep.mubr.msk.f32.mxu1 %vm83_vm0, %v65_v36 }
  0x28   :  { %1097 = vmatmul.mubr.msk.f32.gmra.mrb[16].mxu0 %vm83_vm0, %v34_v37 }
  0x29   :  { %1145 = vmatmul.mubr.msk.f32.gmra.mrb[16].mxu1 %vm83_vm0, %v66_v38  ;;  %1099 = vmatprep.mubr.msk.f32.mxu0 %vm83_vm0, %v35_v39 }
  0x2a   :  { %1147 = vmatprep.mubr.msk.f32.mxu1 %vm83_vm0, %v67_v40 }
  0x2c   :  { %1100 = vmatmul.mubr.msk.f32.gmra.mrb[18].mxu0 %vm83_vm0, %v36_v41 }
  0x2d   :  { %1148 = vmatmul.mubr.msk.f32.gmra.mrb[18].mxu1 %vm83_vm0, %v68_v42  ;;  %1102 = vmatprep.mubr.msk.f32.mxu0 %vm83_vm0, %v37_v43 }
  0x2e   :  { %1150 = vmatprep.mubr.msk.f32.mxu1 %vm83_vm0, %v69_v44 }
  0x30   :  { %1103 = vmatmul.mubr.msk.f32.gmra.mrb[20].mxu0 %vm83_vm0, %v38_v45 }
  0x31   :  { %1151 = vmatmul.mubr.msk.f32.gmra.mrb[20].mxu1 %vm83_vm0, %v70_v46  ;;  %1105 = vmatprep.mubr.msk.f32.mxu0 %vm83_vm0, %v39_v47 }
  0x32   :  { %1153 = vmatprep.mubr.msk.f32.mxu1 %vm83_vm0, %v71_v48 }
  0x34   :  { %1106 = vmatmul.mubr.msk.f32.gmra.mrb[22].mxu0 %vm83_vm0, %v40_v49 }
  0x35   :  { %1154 = vmatmul.mubr.msk.f32.gmra.mrb[22].mxu1 %vm83_vm0, %v72_v50  ;;  %1108 = vmatprep.mubr.msk.f32.mxu0 %vm83_vm0, %v41_v51 }
  0x36   :  { %1156 = vmatprep.mubr.msk.f32.mxu1 %vm83_vm0, %v73_v52 }
  0x38   :  { %1109 = vmatmul.mubr.msk.f32.gmra.mrb[24].mxu0 %vm83_vm0, %v42_v53 }
  0x39   :  { %1157 = vmatmul.mubr.msk.f32.gmra.mrb[24].mxu1 %vm83_vm0, %v74_v54  ;;  %1111 = vmatprep.mubr.msk.f32.mxu0 %vm83_vm0, %v43_v55 }
  0x3a   :  { %1159 = vmatprep.mubr.msk.f32.mxu1 %vm83_vm0, %v75_v56 }
  0x3c   :  { %1112 = vmatmul.mubr.msk.f32.gmra.mrb[26].mxu0 %vm83_vm0, %v44_v57 }
  0x3d   :  { %1160 = vmatmul.mubr.msk.f32.gmra.mrb[26].mxu1 %vm83_vm0, %v76_v58  ;;  %1114 = vmatprep.mubr.msk.f32.mxu0 %vm83_vm0, %v45_v59 }
  0x3e   :  { %1162 = vmatprep.mubr.msk.f32.mxu1 %vm83_vm0, %v77_v60 }
  0x40   :  { %1115 = vmatmul.mubr.msk.f32.gmra.mrb[28].mxu0 %vm83_vm0, %v46_v61 }
  0x41   :  { %1163 = vmatmul.mubr.msk.f32.gmra.mrb[28].mxu1 %vm83_vm0, %v78_v62  ;;  %1117 = vmatprep.mubr.msk.f32.mxu0 %vm83_vm0, %v47_v63 }
  0x42   :  { %1165 = vmatprep.mubr.msk.f32.mxu1 %vm83_vm0, %v79_v0 }
  0x44   :  { %1118 = vmatmul.mubr.msk.f32.gmra.mrb[30].mxu0 %vm83_vm0, %v48_v1 }
  0x45   :  { %1166 = vmatmul.mubr.msk.f32.gmra.mrb[30].mxu1 %vm83_vm0, %v80_v2 }
  0xdb   :  { %v1074_v4 = vpop.f32.mrb[0].mxu0 }
  0xdc   :  { %v1122_v6 = vpop.f32.mrb[0].mxu1  ;;  %v669_v7 = vmul.f32 %v1074_v4, %v1464_v3  ;;  %v342_v9 = vpop.f32.mrb[1].mxu0 }
  0xdd   :  { %v701_v8 = vmul.f32 %v1122_v6, %v1464_v3  ;;  %v502_v10 = vpop.f32.mrb[1].mxu1  ;;  %v668_v11 = vmul.f32 %v1464_v3, %v342_v9 }
  0xde   :  { %v700_v12 = vmul.f32 %v1464_v3, %v502_v10  ;;  %v740_v13 = vadd.f32 %v1469_v5, %v669_v7 }
  0xdf   :  { %v772_v14 = vadd.f32 %v1469_v5, %v701_v8  ;;  %v739_v15 = vadd.f32 %v1469_v5, %v668_v11  ;;  %v1077_v17 = vpop.f32.mrb[2].mxu0 }
  0xe0   :  { %v771_v16 = vadd.f32 %v1469_v5, %v700_v12  ;;  %v1125_v18 = vpop.f32.mrb[2].mxu1  ;;  %v804_v19 = vmax.f32 %v740_v13, 0.0  ;;  %v671_v21 = vmul.f32 %v1077_v17, %v1464_v3  ;;  %v352_v23 = vpop.f32.mrb[3].mxu0 }
  0xe1   :  { %v836_v20 = vmax.f32 %v772_v14, 0.0  ;;  %v703_v22 = vmul.f32 %v1125_v18, %v1464_v3  ;;  %v512_v24 = vpop.f32.mrb[3].mxu1  ;;  %v803_v25 = vmax.f32 %v739_v15, 0.0  ;;  %v670_v27 = vmul.f32 %v1464_v3, %v352_v23 }
  0xe2   :  { %v835_v26 = vmax.f32 %v771_v16, 0.0  ;;  %v702_v28 = vmul.f32 %v1464_v3, %v512_v24  ;;  %869 = vst.msk [vmem:[%s1859_s4 + $0x8] sm:$0xff] %vm867_vm1, %v804_v19  ;;  %v742_v29 = vadd.f32 %v1469_v5, %v671_v21 }
  0xe3   :  { %901 = vst.msk [vmem:[%s1859_s4 + $0x108] sm:$0xff] %vm867_vm1, %v836_v20  ;;  %v774_v30 = vadd.f32 %v1469_v5, %v703_v22  ;;  %868 = vst.msk [vmem:[%s1859_s4] sm:$0xff] %vm867_vm1, %v803_v25  ;;  %v741_v31 = vadd.f32 %v1469_v5, %v670_v27  ;;  %v1080_v33 = vpop.f32.mrb[4].mxu0 }
  0xe4   :  { %900 = vst.msk [vmem:[%s1859_s4 + $0x100] sm:$0xff] %vm867_vm1, %v835_v26  ;;  %v773_v32 = vadd.f32 %v1469_v5, %v702_v28  ;;  %v1128_v34 = vpop.f32.mrb[4].mxu1  ;;  %v806_v35 = vmax.f32 %v742_v29, 0.0  ;;  %v673_v37 = vmul.f32 %v1080_v33, %v1464_v3  ;;  %v362_v39 = vpop.f32.mrb[5].mxu0 }
  0xe5   :  { %v838_v36 = vmax.f32 %v774_v30, 0.0  ;;  %v705_v38 = vmul.f32 %v1128_v34, %v1464_v3  ;;  %v522_v40 = vpop.f32.mrb[5].mxu1  ;;  %v805_v41 = vmax.f32 %v741_v31, 0.0  ;;  %v672_v43 = vmul.f32 %v1464_v3, %v362_v39 }
  0xe6   :  { %v837_v42 = vmax.f32 %v773_v32, 0.0  ;;  %v704_v44 = vmul.f32 %v1464_v3, %v522_v40  ;;  %871 = vst.msk [vmem:[%s1859_s4 + $0x18] sm:$0xff] %vm867_vm1, %v806_v35  ;;  %v744_v45 = vadd.f32 %v1469_v5, %v673_v37 }
  0xe7   :  { %903 = vst.msk [vmem:[%s1859_s4 + $0x118] sm:$0xff] %vm867_vm1, %v838_v36  ;;  %v776_v46 = vadd.f32 %v1469_v5, %v705_v38  ;;  %870 = vst.msk [vmem:[%s1859_s4 + $0x10] sm:$0xff] %vm867_vm1, %v805_v41  ;;  %v743_v47 = vadd.f32 %v1469_v5, %v672_v43  ;;  %v1083_v49 = vpop.f32.mrb[6].mxu0 }
  0xe8   :  { %902 = vst.msk [vmem:[%s1859_s4 + $0x110] sm:$0xff] %vm867_vm1, %v837_v42  ;;  %v775_v48 = vadd.f32 %v1469_v5, %v704_v44  ;;  %v1131_v50 = vpop.f32.mrb[6].mxu1  ;;  %v808_v51 = vmax.f32 %v744_v45, 0.0  ;;  %v675_v53 = vmul.f32 %v1083_v49, %v1464_v3  ;;  %v372_v55 = vpop.f32.mrb[7].mxu0 }
  0xe9   :  { %v840_v52 = vmax.f32 %v776_v46, 0.0  ;;  %v707_v54 = vmul.f32 %v1131_v50, %v1464_v3  ;;  %v532_v56 = vpop.f32.mrb[7].mxu1  ;;  %v807_v57 = vmax.f32 %v743_v47, 0.0  ;;  %v674_v59 = vmul.f32 %v1464_v3, %v372_v55 }
  0xea   :  { %v839_v58 = vmax.f32 %v775_v48, 0.0  ;;  %v706_v60 = vmul.f32 %v1464_v3, %v532_v56  ;;  %873 = vst.msk [vmem:[%s1859_s4 + $0x28] sm:$0xff] %vm867_vm1, %v808_v51  ;;  %v746_v61 = vadd.f32 %v1469_v5, %v675_v53 }
  0xeb   :  { %905 = vst.msk [vmem:[%s1859_s4 + $0x128] sm:$0xff] %vm867_vm1, %v840_v52  ;;  %v778_v62 = vadd.f32 %v1469_v5, %v707_v54  ;;  %872 = vst.msk [vmem:[%s1859_s4 + $0x20] sm:$0xff] %vm867_vm1, %v807_v57  ;;  %v745_v63 = vadd.f32 %v1469_v5, %v674_v59  ;;  %v1086_v1 = vpop.f32.mrb[8].mxu0 }
  0xec   :  { %904 = vst.msk [vmem:[%s1859_s4 + $0x120] sm:$0xff] %vm867_vm1, %v839_v58  ;;  %v777_v0 = vadd.f32 %v1469_v5, %v706_v60  ;;  %v1134_v2 = vpop.f32.mrb[8].mxu1  ;;  %v810_v4 = vmax.f32 %v746_v61, 0.0  ;;  %v677_v7 = vmul.f32 %v1086_v1, %v1464_v3  ;;  %v382_v9 = vpop.f32.mrb[9].mxu0 }
  0xed   :  { %v842_v6 = vmax.f32 %v778_v62, 0.0  ;;  %v709_v8 = vmul.f32 %v1134_v2, %v1464_v3  ;;  %v542_v10 = vpop.f32.mrb[9].mxu1  ;;  %v809_v11 = vmax.f32 %v745_v63, 0.0  ;;  %v676_v13 = vmul.f32 %v1464_v3, %v382_v9 }
  0xee   :  { %v841_v12 = vmax.f32 %v777_v0, 0.0  ;;  %v708_v14 = vmul.f32 %v1464_v3, %v542_v10  ;;  %875 = vst.msk [vmem:[%s1859_s4 + $0x38] sm:$0xff] %vm867_vm1, %v810_v4  ;;  %v748_v15 = vadd.f32 %v1469_v5, %v677_v7 }
  0xef   :  { %907 = vst.msk [vmem:[%s1859_s4 + $0x138] sm:$0xff] %vm867_vm1, %v842_v6  ;;  %v780_v16 = vadd.f32 %v1469_v5, %v709_v8  ;;  %874 = vst.msk [vmem:[%s1859_s4 + $0x30] sm:$0xff] %vm867_vm1, %v809_v11  ;;  %v747_v17 = vadd.f32 %v1469_v5, %v676_v13  ;;  %v1089_v19 = vpop.f32.mrb[10].mxu0 }
  0xf0   :  { %906 = vst.msk [vmem:[%s1859_s4 + $0x130] sm:$0xff] %vm867_vm1, %v841_v12  ;;  %v779_v18 = vadd.f32 %v1469_v5, %v708_v14  ;;  %v1137_v20 = vpop.f32.mrb[10].mxu1  ;;  %v812_v21 = vmax.f32 %v748_v15, 0.0  ;;  %v679_v23 = vmul.f32 %v1089_v19, %v1464_v3  ;;  %v392_v25 = vpop.f32.mrb[11].mxu0 }
  0xf1   :  { %v844_v22 = vmax.f32 %v780_v16, 0.0  ;;  %v711_v24 = vmul.f32 %v1137_v20, %v1464_v3  ;;  %v552_v26 = vpop.f32.mrb[11].mxu1  ;;  %v811_v27 = vmax.f32 %v747_v17, 0.0  ;;  %v678_v29 = vmul.f32 %v1464_v3, %v392_v25 }
  0xf2   :  { %v843_v28 = vmax.f32 %v779_v18, 0.0  ;;  %v710_v30 = vmul.f32 %v1464_v3, %v552_v26  ;;  %877 = vst.msk [vmem:[%s1859_s4 + $0x48] sm:$0xff] %vm867_vm1, %v812_v21  ;;  %v750_v31 = vadd.f32 %v1469_v5, %v679_v23 }
  0xf3   :  { %909 = vst.msk [vmem:[%s1859_s4 + $0x148] sm:$0xff] %vm867_vm1, %v844_v22  ;;  %v782_v32 = vadd.f32 %v1469_v5, %v711_v24  ;;  %876 = vst.msk [vmem:[%s1859_s4 + $0x40] sm:$0xff] %vm867_vm1, %v811_v27  ;;  %v749_v33 = vadd.f32 %v1469_v5, %v678_v29  ;;  %v1092_v35 = vpop.f32.mrb[12].mxu0 }
  0xf4   :  { %908 = vst.msk [vmem:[%s1859_s4 + $0x140] sm:$0xff] %vm867_vm1, %v843_v28  ;;  %v781_v34 = vadd.f32 %v1469_v5, %v710_v30  ;;  %v1140_v36 = vpop.f32.mrb[12].mxu1  ;;  %v814_v37 = vmax.f32 %v750_v31, 0.0  ;;  %v681_v39 = vmul.f32 %v1092_v35, %v1464_v3  ;;  %v402_v41 = vpop.f32.mrb[13].mxu0 }
  0xf5   :  { %v846_v38 = vmax.f32 %v782_v32, 0.0  ;;  %v713_v40 = vmul.f32 %v1140_v36, %v1464_v3  ;;  %v562_v42 = vpop.f32.mrb[13].mxu1  ;;  %v813_v43 = vmax.f32 %v749_v33, 0.0  ;;  %v680_v45 = vmul.f32 %v1464_v3, %v402_v41 }
  0xf6   :  { %v845_v44 = vmax.f32 %v781_v34, 0.0  ;;  %v712_v46 = vmul.f32 %v1464_v3, %v562_v42  ;;  %879 = vst.msk [vmem:[%s1859_s4 + $0x58] sm:$0xff] %vm867_vm1, %v814_v37  ;;  %v752_v47 = vadd.f32 %v1469_v5, %v681_v39 }
  0xf7   :  { %911 = vst.msk [vmem:[%s1859_s4 + $0x158] sm:$0xff] %vm867_vm1, %v846_v38  ;;  %v784_v48 = vadd.f32 %v1469_v5, %v713_v40  ;;  %878 = vst.msk [vmem:[%s1859_s4 + $0x50] sm:$0xff] %vm867_vm1, %v813_v43  ;;  %v751_v49 = vadd.f32 %v1469_v5, %v680_v45  ;;  %v1095_v51 = vpop.f32.mrb[14].mxu0 }
  0xf8   :  { %910 = vst.msk [vmem:[%s1859_s4 + $0x150] sm:$0xff] %vm867_vm1, %v845_v44  ;;  %v783_v50 = vadd.f32 %v1469_v5, %v712_v46  ;;  %v1143_v52 = vpop.f32.mrb[14].mxu1  ;;  %v816_v53 = vmax.f32 %v752_v47, 0.0  ;;  %v683_v55 = vmul.f32 %v1095_v51, %v1464_v3  ;;  %v412_v57 = vpop.f32.mrb[15].mxu0 }
  0xf9   :  { %v848_v54 = vmax.f32 %v784_v48, 0.0  ;;  %v715_v56 = vmul.f32 %v1143_v52, %v1464_v3  ;;  %v572_v58 = vpop.f32.mrb[15].mxu1  ;;  %v815_v59 = vmax.f32 %v751_v49, 0.0  ;;  %v682_v61 = vmul.f32 %v1464_v3, %v412_v57 }
  0xfa   :  { %v847_v60 = vmax.f32 %v783_v50, 0.0  ;;  %v714_v62 = vmul.f32 %v1464_v3, %v572_v58  ;;  %881 = vst.msk [vmem:[%s1859_s4 + $0x68] sm:$0xff] %vm867_vm1, %v816_v53  ;;  %v754_v63 = vadd.f32 %v1469_v5, %v683_v55 }
  0xfb   :  { %913 = vst.msk [vmem:[%s1859_s4 + $0x168] sm:$0xff] %vm867_vm1, %v848_v54  ;;  %v786_v0 = vadd.f32 %v1469_v5, %v715_v56  ;;  %880 = vst.msk [vmem:[%s1859_s4 + $0x60] sm:$0xff] %vm867_vm1, %v815_v59  ;;  %v753_v1 = vadd.f32 %v1469_v5, %v682_v61  ;;  %v1098_v4 = vpop.f32.mrb[16].mxu0 }
  0xfc   :  { %912 = vst.msk [vmem:[%s1859_s4 + $0x160] sm:$0xff] %vm867_vm1, %v847_v60  ;;  %v785_v2 = vadd.f32 %v1469_v5, %v714_v62  ;;  %v1146_v6 = vpop.f32.mrb[16].mxu1  ;;  %v818_v7 = vmax.f32 %v754_v63, 0.0  ;;  %v685_v9 = vmul.f32 %v1098_v4, %v1464_v3  ;;  %v422_v11 = vpop.f32.mrb[17].mxu0 }
  0xfd   :  { %v850_v8 = vmax.f32 %v786_v0, 0.0  ;;  %v717_v10 = vmul.f32 %v1146_v6, %v1464_v3  ;;  %v582_v12 = vpop.f32.mrb[17].mxu1  ;;  %v817_v13 = vmax.f32 %v753_v1, 0.0  ;;  %v684_v15 = vmul.f32 %v1464_v3, %v422_v11 }
  0xfe   :  { %v849_v14 = vmax.f32 %v785_v2, 0.0  ;;  %v716_v16 = vmul.f32 %v1464_v3, %v582_v12  ;;  %883 = vst.msk [vmem:[%s1859_s4 + $0x78] sm:$0xff] %vm867_vm1, %v818_v7  ;;  %v756_v17 = vadd.f32 %v1469_v5, %v685_v9 }
  0xff   :  { %915 = vst.msk [vmem:[%s1859_s4 + $0x178] sm:$0xff] %vm867_vm1, %v850_v8  ;;  %v788_v18 = vadd.f32 %v1469_v5, %v717_v10  ;;  %882 = vst.msk [vmem:[%s1859_s4 + $0x70] sm:$0xff] %vm867_vm1, %v817_v13  ;;  %v755_v19 = vadd.f32 %v1469_v5, %v684_v15  ;;  %v1101_v21 = vpop.f32.mrb[18].mxu0 }
 0x100   :  { %914 = vst.msk [vmem:[%s1859_s4 + $0x170] sm:$0xff] %vm867_vm1, %v849_v14  ;;  %v787_v20 = vadd.f32 %v1469_v5, %v716_v16  ;;  %v1149_v22 = vpop.f32.mrb[18].mxu1  ;;  %v820_v23 = vmax.f32 %v756_v17, 0.0  ;;  %v687_v25 = vmul.f32 %v1101_v21, %v1464_v3  ;;  %v432_v27 = vpop.f32.mrb[19].mxu0 }
 0x101   :  { %v852_v24 = vmax.f32 %v788_v18, 0.0  ;;  %v719_v26 = vmul.f32 %v1149_v22, %v1464_v3  ;;  %v592_v28 = vpop.f32.mrb[19].mxu1  ;;  %v819_v29 = vmax.f32 %v755_v19, 0.0  ;;  %v686_v31 = vmul.f32 %v1464_v3, %v432_v27 }
 0x102   :  { %v851_v30 = vmax.f32 %v787_v20, 0.0  ;;  %v718_v32 = vmul.f32 %v1464_v3, %v592_v28  ;;  %885 = vst.msk [vmem:[%s1859_s4 + $0x88] sm:$0xff] %vm867_vm1, %v820_v23  ;;  %v758_v33 = vadd.f32 %v1469_v5, %v687_v25 }
 0x103   :  { %917 = vst.msk [vmem:[%s1859_s4 + $0x188] sm:$0xff] %vm867_vm1, %v852_v24  ;;  %v790_v34 = vadd.f32 %v1469_v5, %v719_v26  ;;  %884 = vst.msk [vmem:[%s1859_s4 + $0x80] sm:$0xff] %vm867_vm1, %v819_v29  ;;  %v757_v35 = vadd.f32 %v1469_v5, %v686_v31  ;;  %v1104_v37 = vpop.f32.mrb[20].mxu0 }
 0x104   :  { %916 = vst.msk [vmem:[%s1859_s4 + $0x180] sm:$0xff] %vm867_vm1, %v851_v30  ;;  %v789_v36 = vadd.f32 %v1469_v5, %v718_v32  ;;  %v1152_v38 = vpop.f32.mrb[20].mxu1  ;;  %v822_v39 = vmax.f32 %v758_v33, 0.0  ;;  %v689_v41 = vmul.f32 %v1104_v37, %v1464_v3  ;;  %v442_v43 = vpop.f32.mrb[21].mxu0 }
 0x105   :  { %v854_v40 = vmax.f32 %v790_v34, 0.0  ;;  %v721_v42 = vmul.f32 %v1152_v38, %v1464_v3  ;;  %v602_v44 = vpop.f32.mrb[21].mxu1  ;;  %v821_v45 = vmax.f32 %v757_v35, 0.0  ;;  %v688_v47 = vmul.f32 %v1464_v3, %v442_v43 }
 0x106   :  { %v853_v46 = vmax.f32 %v789_v36, 0.0  ;;  %v720_v48 = vmul.f32 %v1464_v3, %v602_v44  ;;  %887 = vst.msk [vmem:[%s1859_s4 + $0x98] sm:$0xff] %vm867_vm1, %v822_v39  ;;  %v760_v49 = vadd.f32 %v1469_v5, %v689_v41 }
 0x107   :  { %919 = vst.msk [vmem:[%s1859_s4 + $0x198] sm:$0xff] %vm867_vm1, %v854_v40  ;;  %v792_v50 = vadd.f32 %v1469_v5, %v721_v42  ;;  %886 = vst.msk [vmem:[%s1859_s4 + $0x90] sm:$0xff] %vm867_vm1, %v821_v45  ;;  %v759_v51 = vadd.f32 %v1469_v5, %v688_v47  ;;  %v1107_v53 = vpop.f32.mrb[22].mxu0 }
 0x108   :  { %918 = vst.msk [vmem:[%s1859_s4 + $0x190] sm:$0xff] %vm867_vm1, %v853_v46  ;;  %v791_v52 = vadd.f32 %v1469_v5, %v720_v48  ;;  %v1155_v54 = vpop.f32.mrb[22].mxu1  ;;  %v824_v55 = vmax.f32 %v760_v49, 0.0  ;;  %v691_v57 = vmul.f32 %v1107_v53, %v1464_v3  ;;  %v452_v59 = vpop.f32.mrb[23].mxu0 }
 0x109   :  { %v856_v56 = vmax.f32 %v792_v50, 0.0  ;;  %v723_v58 = vmul.f32 %v1155_v54, %v1464_v3  ;;  %v612_v60 = vpop.f32.mrb[23].mxu1  ;;  %v823_v61 = vmax.f32 %v759_v51, 0.0  ;;  %v690_v63 = vmul.f32 %v1464_v3, %v452_v59 }
 0x10a   :  { %v855_v62 = vmax.f32 %v791_v52, 0.0  ;;  %v722_v0 = vmul.f32 %v1464_v3, %v612_v60  ;;  %889 = vst.msk [vmem:[%s1859_s4 + $0xa8] sm:$0xff] %vm867_vm1, %v824_v55  ;;  %v762_v1 = vadd.f32 %v1469_v5, %v691_v57 }
 0x10b   :  { %921 = vst.msk [vmem:[%s1859_s4 + $0x1a8] sm:$0xff] %vm867_vm1, %v856_v56  ;;  %v794_v2 = vadd.f32 %v1469_v5, %v723_v58  ;;  %888 = vst.msk [vmem:[%s1859_s4 + $0xa0] sm:$0xff] %vm867_vm1, %v823_v61  ;;  %v761_v4 = vadd.f32 %v1469_v5, %v690_v63  ;;  %v1110_v7 = vpop.f32.mrb[24].mxu0 }
 0x10c   :  { %920 = vst.msk [vmem:[%s1859_s4 + $0x1a0] sm:$0xff] %vm867_vm1, %v855_v62  ;;  %v793_v6 = vadd.f32 %v1469_v5, %v722_v0  ;;  %v1158_v8 = vpop.f32.mrb[24].mxu1  ;;  %v826_v9 = vmax.f32 %v762_v1, 0.0  ;;  %v693_v11 = vmul.f32 %v1110_v7, %v1464_v3  ;;  %v462_v13 = vpop.f32.mrb[25].mxu0 }
 0x10d   :  { %v858_v10 = vmax.f32 %v794_v2, 0.0  ;;  %v725_v12 = vmul.f32 %v1158_v8, %v1464_v3  ;;  %v622_v14 = vpop.f32.mrb[25].mxu1  ;;  %v825_v15 = vmax.f32 %v761_v4, 0.0  ;;  %v692_v17 = vmul.f32 %v1464_v3, %v462_v13 }
 0x10e   :  { %v857_v16 = vmax.f32 %v793_v6, 0.0  ;;  %v724_v18 = vmul.f32 %v1464_v3, %v622_v14  ;;  %891 = vst.msk [vmem:[%s1859_s4 + $0xb8] sm:$0xff] %vm867_vm1, %v826_v9  ;;  %v764_v19 = vadd.f32 %v1469_v5, %v693_v11 }
 0x10f   :  { %923 = vst.msk [vmem:[%s1859_s4 + $0x1b8] sm:$0xff] %vm867_vm1, %v858_v10  ;;  %v796_v20 = vadd.f32 %v1469_v5, %v725_v12  ;;  %890 = vst.msk [vmem:[%s1859_s4 + $0xb0] sm:$0xff] %vm867_vm1, %v825_v15  ;;  %v763_v21 = vadd.f32 %v1469_v5, %v692_v17  ;;  %v1113_v23 = vpop.f32.mrb[26].mxu0 }
 0x110   :  { %922 = vst.msk [vmem:[%s1859_s4 + $0x1b0] sm:$0xff] %vm867_vm1, %v857_v16  ;;  %v795_v22 = vadd.f32 %v1469_v5, %v724_v18  ;;  %v1161_v24 = vpop.f32.mrb[26].mxu1  ;;  %v828_v25 = vmax.f32 %v764_v19, 0.0  ;;  %v695_v27 = vmul.f32 %v1113_v23, %v1464_v3  ;;  %v472_v29 = vpop.f32.mrb[27].mxu0 }
 0x111   :  { %v860_v26 = vmax.f32 %v796_v20, 0.0  ;;  %v727_v28 = vmul.f32 %v1161_v24, %v1464_v3  ;;  %v632_v30 = vpop.f32.mrb[27].mxu1  ;;  %v827_v31 = vmax.f32 %v763_v21, 0.0  ;;  %v694_v33 = vmul.f32 %v1464_v3, %v472_v29 }
 0x112   :  { %v859_v32 = vmax.f32 %v795_v22, 0.0  ;;  %v726_v34 = vmul.f32 %v1464_v3, %v632_v30  ;;  %893 = vst.msk [vmem:[%s1859_s4 + $0xc8] sm:$0xff] %vm867_vm1, %v828_v25  ;;  %v766_v35 = vadd.f32 %v1469_v5, %v695_v27 }
 0x113   :  { %925 = vst.msk [vmem:[%s1859_s4 + $0x1c8] sm:$0xff] %vm867_vm1, %v860_v26  ;;  %v798_v36 = vadd.f32 %v1469_v5, %v727_v28  ;;  %892 = vst.msk [vmem:[%s1859_s4 + $0xc0] sm:$0xff] %vm867_vm1, %v827_v31  ;;  %v765_v37 = vadd.f32 %v1469_v5, %v694_v33  ;;  %v1116_v39 = vpop.f32.mrb[28].mxu0 }
 0x114   :  { %924 = vst.msk [vmem:[%s1859_s4 + $0x1c0] sm:$0xff] %vm867_vm1, %v859_v32  ;;  %v797_v38 = vadd.f32 %v1469_v5, %v726_v34  ;;  %v1164_v40 = vpop.f32.mrb[28].mxu1  ;;  %v830_v41 = vmax.f32 %v766_v35, 0.0  ;;  %v697_v43 = vmul.f32 %v1116_v39, %v1464_v3  ;;  %v482_v45 = vpop.f32.mrb[29].mxu0 }
 0x115   :  { %v862_v42 = vmax.f32 %v798_v36, 0.0  ;;  %v729_v44 = vmul.f32 %v1164_v40, %v1464_v3  ;;  %v642_v46 = vpop.f32.mrb[29].mxu1  ;;  %v829_v47 = vmax.f32 %v765_v37, 0.0  ;;  %v696_v49 = vmul.f32 %v1464_v3, %v482_v45 }
 0x116   :  { %v861_v48 = vmax.f32 %v797_v38, 0.0  ;;  %v728_v50 = vmul.f32 %v1464_v3, %v642_v46  ;;  %895 = vst.msk [vmem:[%s1859_s4 + $0xd8] sm:$0xff] %vm867_vm1, %v830_v41  ;;  %v768_v51 = vadd.f32 %v1469_v5, %v697_v43 }
 0x117   :  { %927 = vst.msk [vmem:[%s1859_s4 + $0x1d8] sm:$0xff] %vm867_vm1, %v862_v42  ;;  %v800_v52 = vadd.f32 %v1469_v5, %v729_v44  ;;  %894 = vst.msk [vmem:[%s1859_s4 + $0xd0] sm:$0xff] %vm867_vm1, %v829_v47  ;;  %v767_v53 = vadd.f32 %v1469_v5, %v696_v49  ;;  %v1119_v55 = vpop.f32.mrb[30].mxu0 }
 0x118   :  { %926 = vst.msk [vmem:[%s1859_s4 + $0x1d0] sm:$0xff] %vm867_vm1, %v861_v48  ;;  %v799_v54 = vadd.f32 %v1469_v5, %v728_v50  ;;  %v1167_v56 = vpop.f32.mrb[30].mxu1  ;;  %v832_v57 = vmax.f32 %v768_v51, 0.0  ;;  %v699_v59 = vmul.f32 %v1119_v55, %v1464_v3  ;;  %v492_v61 = vpop.f32.mrb[31].mxu0 }
 0x119   :  { %v864_v58 = vmax.f32 %v800_v52, 0.0  ;;  %v731_v60 = vmul.f32 %v1167_v56, %v1464_v3  ;;  %v652_v62 = vpop.f32.mrb[31].mxu1  ;;  %v831_v63 = vmax.f32 %v767_v53, 0.0  ;;  %v698_v1 = vmul.f32 %v1464_v3, %v492_v61 }
 0x11a   :  { %v863_v0 = vmax.f32 %v799_v54, 0.0  ;;  %v730_v2 = vmul.f32 %v1464_v3, %v652_v62  ;;  %897 = vst.msk [vmem:[%s1859_s4 + $0xe8] sm:$0xff] %vm867_vm1, %v832_v57  ;;  %v770_v4 = vadd.f32 %v1469_v5, %v699_v59 }
 0x11b   :  { %929 = vst.msk [vmem:[%s1859_s4 + $0x1e8] sm:$0xff] %vm867_vm1, %v864_v58  ;;  %v802_v6 = vadd.f32 %v1469_v5, %v731_v60  ;;  %896 = vst.msk [vmem:[%s1859_s4 + $0xe0] sm:$0xff] %vm867_vm1, %v831_v63  ;;  %v769_v3 = vadd.f32 %v1469_v5, %v698_v1 }
 0x11c   :  { %928 = vst.msk [vmem:[%s1859_s4 + $0x1e0] sm:$0xff] %vm867_vm1, %v863_v0  ;;  %v801_v7 = vadd.f32 %v1469_v5, %v730_v2  ;;  %v834_v8 = vmax.f32 %v770_v4, 0.0 }
 0x11d   :  { %v866_v9 = vmax.f32 %v802_v6, 0.0  ;;  %v833_v10 = vmax.f32 %v769_v3, 0.0 }
 0x11e   :  { %v865_v11 = vmax.f32 %v801_v7, 0.0  ;;  %899 = vst.msk [vmem:[%s1859_s4 + $0xf8] sm:$0xff] %vm867_vm1, %v834_v8 }
 0x11f   :  { %931 = vst.msk [vmem:[%s1859_s4 + $0x1f8] sm:$0xff] %vm867_vm1, %v866_v9  ;;  %898 = vst.msk [vmem:[%s1859_s4 + $0xf0] sm:$0xff] %vm867_vm1, %v833_v10 }
 0x120   :  { %930 = vst.msk [vmem:[%s1859_s4 + $0x1f0] sm:$0xff] %vm867_vm1, %v865_v11 }

</bundles_post_ra>
